<compile_context>
chip_gen: v7x
topology: tpu7x:2x2x1
jax: 0.10.0
libtpu: 0.0.40
codegen_flags: <defaults>
</compile_context>

<pallas_src>
from functools import partial

import jax
import jax.numpy as jnp
from jax.experimental import pallas as pl
from jax.experimental.pallas import tpu as pltpu

_HALO = 128  # lane-aligned halo region; only the last K-1 columns are ever read


def _conv1d_kernel(x_ref, w_ref, side_ref, o_ref, xwide, *, K, tD, tL):
    """One (batch, channel-tile, seq-tile) grid step.

    x_ref   : (tD, tL)        int8  current sequence tile (batch dim squeezed)
    w_ref   : (tD, K)         f32   pre-scaled depthwise taps (in*w scale folded)
    side_ref: (tD, 2)         f32   [:, 0] = dequantized bias, [:, 1] = 1/out_scale
    o_ref   : (tD, tL)        int8
    xwide   : (tD, _HALO+tL)  f32   scratch: [halo | widened current tile]
    """
    j = pl.program_id(2)  # sequence-tile index (innermost, "arbitrary")

    if K > 1:
        @pl.when(j == 0)
        def _zero_halo():
            # Zero only the K-1 halo columns the taps read.
            xwide[:, _HALO - (K - 1):_HALO] = jnp.zeros((tD, K - 1), jnp.float32)

        @pl.when(j > 0)
        def _carry_halo():
            # Previous tile's last K-1 (already widened) columns -> halo slots.
            xwide[:, _HALO - (K - 1):_HALO] = (
                xwide[:, _HALO + tL - (K - 1):_HALO + tL])

    # Widen the int8 tile to f32 exactly ONCE per step (lane-aligned store).
    xwide[:, _HALO:_HALO + tL] = x_ref[...].astype(jnp.float32)

    w = w_ref[...]                                           # (tD, K), pre-scaled f32
    # Bias is already dequantized on the host -> seeds the accumulator directly.
    acc = jnp.broadcast_to(side_ref[:, 0:1], (tD, tL))
    for k in range(K):                                       # K is tiny & static
        shift = K - 1 - k
        acc = acc + w[:, k:k + 1] * xwide[:, _HALO - shift:_HALO - shift + tL]

    # SiLU: exp and reciprocal both run on the EUP slot; VALU stays free.
    e = jnp.exp(jnp.minimum(-acc, 80.0))                     # clamp avoids inf
    y = acc * pl.reciprocal(1.0 + e, approx=True)

    # Requantize per channel (round-half-to-even, matching torch.round).
    q = jnp.clip(jnp.round(y * side_ref[:, 1:2]), -128.0, 127.0)
    o_ref[...] = q.astype(jnp.int8)


def _pick_tile(full, maximum, quantum):
    """Largest multiple of `quantum` that divides `full` and is <= maximum,
    else fall back to the full (untiled) axis (always legal for BlockSpec)."""
    cand = (min(maximum, full) // quantum) * quantum
    while cand >= quantum:
        if full % cand == 0:
            return cand
        cand -= quantum
    return full


def _pick_tile_d(D, maximum, batch):
    """Channel tile: multiple of 32 (int8 sublane pack).  When batch == 1,
    prefer a tile with D // tD >= 2 so both v7x TensorCores get parallel work."""
    quantum = 32
    fallback = None
    cand = (min(maximum, D) // quantum) * quantum
    while cand >= quantum:
        if D % cand == 0:
            if batch > 1 or D // cand >= 2:
                return cand
            if fallback is None:
                fallback = cand
        cand -= quantum
    return fallback if fallback is not None else D


def _vmem_limit(tD, tL, K):
    """Scoped-VMEM limit from the actual per-step footprint, clamped to a
    range that is safe on v7x (64 MiB physical per TC) and v5e/v6e (128 MiB)."""
    io = 4 * tD * tL                         # double-buffered int8 in + out
    scratch = 4 * tD * (_HALO + tL)          # f32 widened-window scratch
    side = 2 * (4 * tD * K + 4 * tD * 128)   # weight + side buffers (lane-padded)
    temps = 16 * tD * tL                     # headroom: f32 accumulator / SiLU temps
    est = int((io + scratch + side + temps) * 1.25)
    return min(64 * 1024 * 1024, max(32 * 1024 * 1024, est))


def _per_channel(seg_sizes, values):
    return jnp.concatenate([jnp.full((n,), float(v), jnp.float32)
                            for n, v in zip(seg_sizes, values)])


def quamba2_conv1d(xBC_i8, w_i8, b_i8, *,
                   x_dim, d_state, n_groups,
                   x_scale, B_scale, C_scale,
                   wx_scale, wB_scale, wC_scale,
                   x_out_scales, B_out_scales, C_out_scales,
                   bx_scale=None, bB_scale=None, bC_scale=None,
                   block_d=256, block_l=4096):
    """int8 causal depthwise conv + SiLU + requant; returns (x, B, C) int8."""
    Bsz, D, L = xBC_i8.shape
    Dw, K = w_i8.shape
    G = n_groups * d_state
    assert Dw == D == x_dim + 2 * G, "channel layout must be [x | B | C]"
    assert K - 1 <= _HALO, "kernel_size too large for the halo region"

    seg = (x_dim, G, G)
    in_vec = _per_channel(seg, (x_scale, B_scale, C_scale))
    w_vec = _per_channel(seg, (wx_scale, wB_scale, wC_scale))
    # Pre-scale the (tiny, D x K) weight on the host: folds the input and
    # weight dequant scales so the kernel never multiplies the full tile.
    w_f = w_i8.astype(jnp.float32) * (in_vec * w_vec)[:, None]        # (D, K)

    if b_i8 is not None:
        bias_f = b_i8.astype(jnp.float32) * _per_channel(
            seg, (bx_scale, bB_scale, bC_scale))
    else:
        bias_f = jnp.zeros((D,), jnp.float32)

    # Per-channel output (requant) scales.
    x_out = jnp.asarray(x_out_scales, jnp.float32)
    if x_out.ndim == 0:
        x_out = jnp.full((x_dim,), x_out, jnp.float32)                # per-tensor case
    out_vec = jnp.concatenate([
        x_out.reshape(x_dim),
        jnp.repeat(jnp.asarray(B_out_scales, jnp.float32).reshape(n_groups), d_state),
        jnp.repeat(jnp.asarray(C_out_scales, jnp.float32).reshape(n_groups), d_state),
    ])
    # Single fused per-channel side input: [:, 0]=bias, [:, 1]=1/out_scale.
    side = jnp.stack([bias_f, 1.0 / out_vec], axis=1)                 # (D, 2)

    tD = _pick_tile_d(D, block_d, Bsz)
    tL = _pick_tile(L, block_l, 128)

    kernel = partial(_conv1d_kernel, K=K, tD=tD, tL=tL)

    out = pl.pallas_call(
        kernel,
        out_shape=jax.ShapeDtypeStruct((Bsz, D, L), jnp.int8),
        grid_spec=pltpu.PrefetchScalarGridSpec(
            num_scalar_prefetch=0,
            grid=(Bsz, D // tD, L // tL),
            in_specs=[
                pl.BlockSpec((None, tD, tL), lambda b, d, j: (b, d, j)),
                pl.BlockSpec((tD, K), lambda b, d, j: (d, 0)),
                pl.BlockSpec((tD, 2), lambda b, d, j: (d, 0)),
            ],
            out_specs=pl.BlockSpec((None, tD, tL), lambda b, d, j: (b, d, j)),
            scratch_shapes=[pltpu.VMEM((tD, _HALO + tL), jnp.float32)],
        ),
        compiler_params=pltpu.CompilerParams(
            # L must stay innermost + "arbitrary": the causal halo in `xwide`
            # is carried across consecutive sequence tiles.
            dimension_semantics=("parallel", "parallel", "arbitrary"),
            vmem_limit_bytes=_vmem_limit(tD, tL, K),
        ),
    )(xBC_i8, w_f, side)

    # Split the fused conv output back into (x, B, C) like the CUDA op.
    x_q = out[:, :x_dim]
    B_q = out[:, x_dim:x_dim + G]
    C_q = out[:, x_dim + G:]
    return x_q, B_q, C_q


def quamba2_conv1d_ref(xBC_i8, w_i8, b_i8, *,
                       x_dim, d_state, n_groups,
                       x_scale, B_scale, C_scale,
                       wx_scale, wB_scale, wC_scale,
                       x_out_scales, B_out_scales, C_out_scales,
                       bx_scale=None, bB_scale=None, bC_scale=None):
    """Pure-JAX reference for validation."""
    Bsz, D, L = xBC_i8.shape
    K = w_i8.shape[1]
    G = n_groups * d_state
    seg = (x_dim, G, G)
    in_vec = _per_channel(seg, (x_scale, B_scale, C_scale))
    w_vec = _per_channel(seg, (wx_scale, wB_scale, wC_scale))
    x_f = xBC_i8.astype(jnp.float32) * in_vec[None, :, None]
    w_f = w_i8.astype(jnp.float32) * w_vec[:, None]
    if b_i8 is not None:
        b_f = b_i8.astype(jnp.float32) * _per_channel(seg, (bx_scale, bB_scale, bC_scale))
    else:
        b_f = jnp.zeros((D,), jnp.float32)
    x_pad = jnp.pad(x_f, ((0, 0), (0, 0), (K - 1, 0)))
    y = jnp.zeros((Bsz, D, L), jnp.float32)
    for k in range(K):
        y = y + w_f[:, k][None, :, None] * x_pad[:, :, k:k + L]
    y = y + b_f[None, :, None]
    y = y * jax.nn.sigmoid(y)
    x_out = jnp.asarray(x_out_scales, jnp.float32)
    if x_out.ndim == 0:
        x_out = jnp.full((x_dim,), x_out, jnp.float32)
    out_vec = jnp.concatenate([
        x_out.reshape(x_dim),
        jnp.repeat(jnp.asarray(B_out_scales, jnp.float32).reshape(n_groups), d_state),
        jnp.repeat(jnp.asarray(C_out_scales, jnp.float32).reshape(n_groups), d_state),
    ])
    q = jnp.clip(jnp.round(y / out_vec[None, :, None]), -128, 127).astype(jnp.int8)
    return q[:, :x_dim], q[:, x_dim:x_dim + G], q[:, x_dim + G:]


if __name__ == "__main__":
    # Small shapes consistent with the module: xBC = [x | B | C] channels.
    Bsz, L, K = 2, 384, 4
    x_dim, d_state, n_groups = 128, 16, 2
    D = x_dim + 2 * n_groups * d_state      # 192

    key = jax.random.PRNGKey(0)
    kx, kw, kb = jax.random.split(key, 3)
    xBC = jax.random.randint(kx, (Bsz, D, L), -128, 128, dtype=jnp.int32).astype(jnp.int8)
    w = jax.random.randint(kw, (D, K), -128, 128, dtype=jnp.int32).astype(jnp.int8)
    b = jax.random.randint(kb, (D,), -128, 128, dtype=jnp.int32).astype(jnp.int8)

    scales = dict(
        x_scale=0.02, B_scale=0.01, C_scale=0.012,
        wx_scale=0.015, wB_scale=0.02, wC_scale=0.018,
        bx_scale=0.05, bB_scale=0.04, bC_scale=0.03,
        x_out_scales=0.06,                                   # per-tensor x requant
        B_out_scales=jnp.array([0.05, 0.055], jnp.float32),  # per ssd-group
        C_out_scales=jnp.array([0.045, 0.05], jnp.float32),
    )

    xr, Br, Cr = quamba2_conv1d_ref(xBC, w, b,
                                    x_dim=x_dim, d_state=d_state, n_groups=n_groups,
                                    **scales)

    # (1) Small tiles deliberately exercise the multi-tile D/L grid and the
    #     causal halo carry; (2) default tiles exercise the production path.
    for bd, bl in ((64, 128), (256, 4096)):
        xq, Bq, Cq = quamba2_conv1d(xBC, w, b,
                                    x_dim=x_dim, d_state=d_state, n_groups=n_groups,
                                    block_d=bd, block_l=bl, **scales)
        jax.block_until_ready((xq, Bq, Cq))

        assert xq.shape == (Bsz, x_dim, L) and xq.dtype == jnp.int8
        assert Bq.shape == (Bsz, n_groups * d_state, L) and Bq.dtype == jnp.int8
        assert Cq.shape == (Bsz, n_groups * d_state, L) and Cq.dtype == jnp.int8
        # Allow off-by-one at quantization boundaries (approx reciprocal / op order).
        for got, ref in ((xq, xr), (Bq, Br), (Cq, Cr)):
            diff = int(jnp.max(jnp.abs(got.astype(jnp.int32) - ref.astype(jnp.int32))))
            assert diff <= 1, f"max |diff| = {diff} (block_d={bd}, block_l={bl})"

    print("KERNEL_OK")
</pallas_src>

<mosaic_0001>
module attributes {stable_mosaic.version = 11 : i64} {
  func.func @_conv1d_kernel(%arg0: i32, %arg1: i32, %arg2: i32, %arg3: memref<1x64x128xi8, #tpu.memory_space<vmem>>, %arg4: memref<64x4xf32, #tpu.memory_space<vmem>>, %arg5: memref<64x2xf32, #tpu.memory_space<vmem>>, %arg6: memref<1x64x128xi8, #tpu.memory_space<vmem>>, %arg7: memref<64x256xf32, #tpu.memory_space<vmem>>) attributes {dimension_semantics = [#tpu.dimension_semantics<parallel>, #tpu.dimension_semantics<parallel>, #tpu.dimension_semantics<arbitrary>], iteration_bounds = array<i64: 2, 3, 3>, scalar_prefetch = 0 : i64, scratch_operands = 1 : i64, tpu.core_type = #tpu.core_type<tc>, window_params = [{transform_indices = @transform_0, window_bounds = array<i64: 1, 64, 128>}, {transform_indices = @transform_1, window_bounds = array<i64: 64, 4>}, {transform_indices = @transform_2, window_bounds = array<i64: 64, 2>}, {transform_indices = @transform_3, window_bounds = array<i64: 1, 64, 128>}]} {
    %c0_i32 = arith.constant 0 : i32
    %0 = arith.cmpi eq, %arg2, %c0_i32 : i32
    %1 = arith.extui %0 : i1 to i32
    %c0_i32_0 = arith.constant 0 : i32
    %2 = arith.cmpi ne, %1, %c0_i32_0 : i32
    scf.if %2 {
      %cst_23 = arith.constant 0.000000e+00 : f32
      %55 = vector.broadcast %cst_23 : f32 to vector<64x3xf32>
      %c0_24 = arith.constant 0 : index
      %c125_25 = arith.constant 125 : index
      %56 = vector.load %arg7[%c0_24, %c125_25] : memref<64x256xf32, #tpu.memory_space<vmem>>, vector<64x3xf32>
      tpu.vector_store %arg7[%c0_24, %c125_25], %55 {strides = array<i32>} : memref<64x256xf32, #tpu.memory_space<vmem>>, vector<64x3xf32>,
    } else {
    }
    %c0_i32_1 = arith.constant 0 : i32
    %3 = arith.cmpi sgt, %arg2, %c0_i32_1 : i32
    %4 = arith.extui %3 : i1 to i32
    %c0_i32_2 = arith.constant 0 : i32
    %5 = arith.cmpi ne, %4, %c0_i32_2 : i32
    scf.if %5 {
      %c0_23 = arith.constant 0 : index
      %c253 = arith.constant 253 : index
      %55 = vector.load %arg7[%c0_23, %c253] : memref<64x256xf32, #tpu.memory_space<vmem>>, vector<64x3xf32>
      %c0_24 = arith.constant 0 : index
      %c125_25 = arith.constant 125 : index
      %56 = vector.load %arg7[%c0_24, %c125_25] : memref<64x256xf32, #tpu.memory_space<vmem>>, vector<64x3xf32>
      tpu.vector_store %arg7[%c0_24, %c125_25], %55 {strides = array<i32>} : memref<64x256xf32, #tpu.memory_space<vmem>>, vector<64x3xf32>,
    } else {
    }
    %c0 = arith.constant 0 : index
    %c0_3 = arith.constant 0 : index
    %c0_4 = arith.constant 0 : index
    %6 = vector.load %arg3[%c0, %c0_3, %c0_4] : memref<1x64x128xi8, #tpu.memory_space<vmem>>, vector<1x64x128xi8>
    %7 = vector.shape_cast %6 : vector<1x64x128xi8> to vector<64x128xi8>
    %8 = arith.sitofp %7 : vector<64x128xi8> to vector<64x128xf32>
    %c0_5 = arith.constant 0 : index
    %c128 = arith.constant 128 : index
    %9 = vector.load %arg7[%c0_5, %c128] : memref<64x256xf32, #tpu.memory_space<vmem>>, vector<64x128xf32>
    tpu.vector_store %arg7[%c0_5, %c128], %8 {strides = array<i32>} : memref<64x256xf32, #tpu.memory_space<vmem>>, vector<64x128xf32>,
    %c0_6 = arith.constant 0 : index
    %c0_7 = arith.constant 0 : index
    %10 = vector.load %arg4[%c0_6, %c0_7] : memref<64x4xf32, #tpu.memory_space<vmem>>, vector<64x4xf32>
    %c0_8 = arith.constant 0 : index
    %c0_9 = arith.constant 0 : index
    %11 = vector.load %arg5[%c0_8, %c0_9] : memref<64x2xf32, #tpu.memory_space<vmem>>, vector<64x1xf32>
    %12 = vector.shape_cast %11 : vector<64x1xf32> to vector<64x1xf32>
    %13 = vector.broadcast %12 : vector<64x1xf32> to vector<64x128xf32>
    %14 = vector.extract_strided_slice %10 {offsets = [0, 0], sizes = [64, 1], strides = [1, 1]} : vector<64x4xf32> to vector<64x1xf32>
    %c0_10 = arith.constant 0 : index
    %c125 = arith.constant 125 : index
    %15 = vector.load %arg7[%c0_10, %c125] : memref<64x256xf32, #tpu.memory_space<vmem>>, vector<64x128xf32>
    %16 = vector.broadcast %14 : vector<64x1xf32> to vector<64x128xf32>
    %17 = arith.mulf %16, %15 : vector<64x128xf32>
    %18 = arith.addf %13, %17 : vector<64x128xf32>
    %19 = vector.extract_strided_slice %10 {offsets = [0, 1], sizes = [64, 1], strides = [1, 1]} : vector<64x4xf32> to vector<64x1xf32>
    %c0_11 = arith.constant 0 : index
    %c126 = arith.constant 126 : index
    %20 = vector.load %arg7[%c0_11, %c126] : memref<64x256xf32, #tpu.memory_space<vmem>>, vector<64x128xf32>
    %21 = vector.broadcast %19 : vector<64x1xf32> to vector<64x128xf32>
    %22 = arith.mulf %21, %20 : vector<64x128xf32>
    %23 = arith.addf %18, %22 : vector<64x128xf32>
    %24 = vector.extract_strided_slice %10 {offsets = [0, 2], sizes = [64, 1], strides = [1, 1]} : vector<64x4xf32> to vector<64x1xf32>
    %c0_12 = arith.constant 0 : index
    %c127 = arith.constant 127 : index
    %25 = vector.load %arg7[%c0_12, %c127] : memref<64x256xf32, #tpu.memory_space<vmem>>, vector<64x128xf32>
    %26 = vector.broadcast %24 : vector<64x1xf32> to vector<64x128xf32>
    %27 = arith.mulf %26, %25 : vector<64x128xf32>
    %28 = arith.addf %23, %27 : vector<64x128xf32>
    %29 = vector.extract_strided_slice %10 {offsets = [0, 3], sizes = [64, 1], strides = [1, 1]} : vector<64x4xf32> to vector<64x1xf32>
    %c0_13 = arith.constant 0 : index
    %c128_14 = arith.constant 128 : index
    %30 = vector.load %arg7[%c0_13, %c128_14] : memref<64x256xf32, #tpu.memory_space<vmem>>, vector<64x128xf32>
    %31 = vector.broadcast %29 : vector<64x1xf32> to vector<64x128xf32>
    %32 = arith.mulf %31, %30 : vector<64x128xf32>
    %33 = arith.addf %28, %32 : vector<64x128xf32>
    %cst = arith.constant 0.000000e+00 : f32
    %34 = vector.broadcast %cst : f32 to vector<64x128xf32>
    %35 = arith.subf %34, %33 : vector<64x128xf32>
    %cst_15 = arith.constant 8.000000e+01 : f32
    %36 = vector.broadcast %cst_15 : f32 to vector<64x128xf32>
    %37 = arith.minimumf %35, %36 : vector<64x128xf32>
    %38 = math.exp %37 : vector<64x128xf32>
    %cst_16 = arith.constant 1.000000e+00 : f32
    %39 = vector.broadcast %cst_16 : f32 to vector<64x128xf32>
    %40 = arith.addf %39, %38 : vector<64x128xf32>
    %41 = tpu.reciprocal %40 {approx = true} : vector<64x128xf32> -> vector<64x128xf32>
    %42 = arith.mulf %33, %41 : vector<64x128xf32>
    %c0_17 = arith.constant 0 : index
    %c1 = arith.constant 1 : index
    %43 = vector.load %arg5[%c0_17, %c1] : memref<64x2xf32, #tpu.memory_space<vmem>>, vector<64x1xf32>
    %44 = vector.broadcast %43 : vector<64x1xf32> to vector<64x128xf32>
    %45 = arith.mulf %42, %44 : vector<64x128xf32>
    %46 = math.roundeven %45 : vector<64x128xf32>
    %cst_18 = arith.constant -1.280000e+02 : f32
    %cst_19 = arith.constant 1.270000e+02 : f32
    %47 = vector.broadcast %cst_18 : f32 to vector<64x128xf32>
    %48 = arith.maximumf %47, %46 : vector<64x128xf32>
    %49 = vector.broadcast %cst_19 : f32 to vector<64x128xf32>
    %50 = arith.minimumf %49, %48 : vector<64x128xf32>
    %51 = arith.fptosi %50 : vector<64x128xf32> to vector<64x128xi8>
    %c0_20 = arith.constant 0 : index
    %c0_21 = arith.constant 0 : index
    %c0_22 = arith.constant 0 : index
    %52 = vector.load %arg6[%c0_20, %c0_21, %c0_22] : memref<1x64x128xi8, #tpu.memory_space<vmem>>, vector<1x64x128xi8>
    %53 = vector.shape_cast %52 : vector<1x64x128xi8> to vector<64x128xi8>
    %54 = vector.shape_cast %51 : vector<64x128xi8> to vector<1x64x128xi8>
    tpu.vector_store %arg6[%c0_20, %c0_21, %c0_22], %54 {strides = array<i32>} : memref<1x64x128xi8, #tpu.memory_space<vmem>>, vector<1x64x128xi8>,
    return
  }
  func.func @transform_0(%arg0: i32, %arg1: i32, %arg2: i32) -> (i32, i32, i32) {
    %c0_i32 = arith.constant 0 : i32
    return %arg0, %arg1, %arg2 : i32, i32, i32
  }
  func.func @transform_1(%arg0: i32, %arg1: i32, %arg2: i32) -> (i32, i32) {
    %c0_i32 = arith.constant 0 : i32
    %c0_i32_0 = arith.constant 0 : i32
    return %arg1, %c0_i32 : i32, i32
  }
  func.func @transform_2(%arg0: i32, %arg1: i32, %arg2: i32) -> (i32, i32) {
    %c0_i32 = arith.constant 0 : i32
    %c0_i32_0 = arith.constant 0 : i32
    return %arg1, %c0_i32 : i32, i32
  }
  func.func @transform_3(%arg0: i32, %arg1: i32, %arg2: i32) -> (i32, i32, i32) {
    %c0_i32 = arith.constant 0 : i32
    return %arg0, %arg1, %arg2 : i32, i32, i32
  }
}

</mosaic_0001>

<bundles_post_ra>
// kernel: tpu_custom_call.1
= control target key start
LH: loop header
LB: loop body
LE: loop exit
PB: predicated region body
PF: predicated region fallthrough
CT: control target
= control target key end

     0   :  { %8 = vsyncpa [#allocation5], 0  ;;  %s2241_s0 = inlined_call_operand.vmem [shape: s8[2,192,384], index: 0, kind: input, shape index: {}]   ;;  %s2242_s1 = inlined_call_operand.vmem [shape: f32[192,4], index: 1, kind: input, shape index: {}]   ;;  %s2243_s2 = inlined_call_operand.vmem [shape: f32[192,2], index: 2, kind: input, shape index: {}]   ;;  %s2244_s3 = inlined_call_operand.hbm [shape: s8[2,192,384], index: 3, kind: output, shape index: {}]  }
   0x1   :  { %10 = vsyncpa [#allocation5 + $0x1], 0  ;;  %s1624_s12 = smov 0   ;;  %s1626_s13 = smov 0  }
   0x2   :  { %s1628_s14 = smov 0   ;;  %s1630_s15 = smov 0  }
   0x3   :  { %s1632_s16 = smov 0   ;;  %s1634_s17 = smov 0  }
   0x4   :  { %s1636_s18 = smov 0   ;;  %s1638_s19 = smov 0  }
   0x5   :  { %s1640_s20 = smov 0   ;;  %s1642_s21 = smov 0  }
   0x6 LB: > { %s28_s22 = sadd.s32 1, %s1577_s18  ;;  %s31_s23 = sadd.s32 1, %s1581_s19  ;;  %s1589_s21 = sphi %s1642_s21, %s16_s21   ;;  %s1585_s20 = sphi %s1640_s20, %s2259_s20   ;;  %s1581_s19 = sphi %s1638_s19, %s2258_s19   ;;  %s1577_s18 = sphi %s1636_s18, %s2257_s18   ;;  %s1573_s17 = sphi %s1634_s17, %s2256_s17   ;;  %s1569_s16 = sphi %s1632_s16, %s2255_s16   ;;  %s1565_s15 = sphi %s1630_s15, %s2254_s15   ;;  %s1561_s14 = sphi %s1628_s14, %s2253_s14   ;;  %s1557_s13 = sphi %s1626_s13, %s2252_s13   ;;  %s1553_s12 = sphi %s1624_s12, %s2251_s12  }
   0x7   : > { %p29_p0 = scmp.ge.s32.totalorder %s28_s22, 3  ;;  %s1263_s24 = sadd.s32 4294967295, %s1589_s21  }
   0x8   : > { %p53_p1 = scmp.ne.s32.totalorder %s1561_s14, %s1557_s13  ;;  %s35_s25 = sadd.s32 1, %s1585_s20 }
   0x9   : > { %s2261_s22 = smov (%p29_p0, %s28_s22), 0  ;;  %s2263_s23 = smov (!%p29_p0, %s31_s23), %s1581_s19 }
   0xa   : > { %p54_p2 = scmp.eq.s32.totalorder %s1589_s21, 0  ;;  %p33_p3 = scmp.ge.s32.totalorder %s2263_s23, 3 }
   0xb   : > { %p139_p4 = scmp.eq.s32.totalorder %s1263_s24, 17  ;;  %s1264_s26 = sadd.s32 4294967294, %s1589_s21  }
   0xc   : > { %p1685_p5 = por %p54_p2, %p53_p1  ;;  %s2265_s23 = smov (%p33_p3, %s2263_s23), 0 }
   0xd   : > { %s2267_s25 = smov (!%p33_p3, %s35_s25), %s1585_s20  ;;  %p1692_p6 = por %p139_p4, %p53_p1 }
   0xe   : > { %p144_p7 = scmp.ne.s32.totalorder %s1557_s13, %s1553_s12  ;;  %p37_p8 = scmp.ge.s32.totalorder %s2267_s25, 2 }
   0xf   : > { %p145_p9 = scmp.eq.s32.totalorder %s1264_s26, 17  ;;  %s40_s29 = ssub.s32 %s1581_s19, %s2265_s23 }
  0x10   : > { %s2269_s25 = smov (%p37_p8, %s2267_s25), 0  ;;  %s42_s30 = ssub.s32 %s1577_s18, %s2261_s22 }
  0x11   : > { %2248 = sst [smem:[#allocation7_spill]] %s2269_s25  ;;  %p1704_p10 = por %p145_p9, %p144_p7 }
  0x12   : > { %s39_s5 = ssub.s32 %s1585_s20, %s2269_s25  ;;  %s46_s8 = sadd.s32 1, %s1561_s14 }
  0x13   : > { %s41_s6 = sor.u32 %s40_s29, %s39_s5  ;;  %p1266_p12 = scmp.ge.s32.totalorder %s1589_s21, 18 }
  0x14   : > { %s43_s7 = sor.u32 %s42_s30, %s41_s6 }
  0x15   : > { %p44_p11 = scmp.eq.s32.totalorder %s43_s7, 0  ;;  %161 = sbr.rel (%p1266_p12) target bundleno = 37 (0x25), region = 16 }
  0x17   : > { %s1712_s9 = scalar_select %p44_p11, %s1561_s14, %s46_s8  }
  0x1c   : > { %164 = sbr.rel (!%p1685_p5) target bundleno = 37 (0x25), region = 20  ;;  %s166_s10 = sand.u32 (%p1685_p5), 1, %s1561_s14  }
  0x1d   : > { %s1286_s11 = smul.u32 (%p1685_p5), 6, %s1581_s19  ;;  %s1267_s24 = sshll.u32 (%p1685_p5), %s166_s10, 4 }
  0x1e   : > { %s1287_s26 = smul.u32 (%p1685_p5), 18, %s1585_s20  ;;  %s168_s25 = scalar_lea.vmem (%p1685_p5), [#allocation3], %s1267_s24 }
  0x1f   : > { %s171_s29 = sadd.s32 (%p1685_p5), %s1577_s18, %s1286_s11 }
  0x20   : > { %s173_s30 = sadd.s32 (%p1685_p5), %s1287_s26, %s171_s29 }
  0x21   : > { %s1270_s5 = sshll.u32 (%p1685_p5), %s173_s30, 3 }
  0x22   : > { %s175_s8 = scalar_lea.vmem (%p1685_p5), %s2241_s0, %s1270_s5 }
  0x23   : > { %v205_v0 = vld [vmem:[%s175_s8] sm:$0xff]  ;;  %v207_v1 = vld [vmem:[%s175_s8 + $0x18] sm:$0xff] }
  0x24   : > { %206 = vst [vmem:[%s168_s25] sm:$0xff] %v205_v0  ;;  %208 = vst [vmem:[%s168_s25 + $0x8] sm:$0xff] %v207_v1 }
  0x25 PF: > { %p1271_p13 = scmp.ge.s32.totalorder %s1589_s21, 1  ;;  %p231_p0 = scmp.lt.s32.totalorder %s1589_s21, 19 }
  0x27   : > { %p232_p1 = pnand %p1271_p13, %p231_p0 }
  0x28   : > { %s238_s27 = sand.u32 (!%p232_p1), 1, %s1557_s13   ;;  %s1274_s10 = sshll.u32 (!%p232_p1), %s1569_s16, 3 }
  0x29   : > { %235 = sbr.rel (%p232_p1) target bundleno = 642 (0x282), region = 66  ;;  %s1730_s11 = sshll.u32 (!%p232_p1), %s238_s27, 4 }
  0x2a   : > { %p273_p2 = scmp.lt.s32.totalorder (!%p232_p1), %s1274_s10, 23  ;;  %s240_s7 = scalar_lea.vmem (!%p232_p1), [#allocation3], %s1730_s11 }
  0x2b   : > { %s1744_s8 = scalar_lea.vmem (!%p232_p1), [#allocation4], %s1730_s11  ;;  %p1278_p3 = scmp.ne.s32.totalorder (!%p232_p1), %s1565_s15, 0 }
  0x30   : > { %s2271_s10 = smov (!%p273_p2, %s1274_s10), 23  ;;  %288 = sbr.rel (%p1278_p3) target bundleno = 55 (0x37), region = 74 }
  0x31   : > { %s1275_s25 = sshll.u32 %s2271_s10, 3  ;;  %vm289_vm0 = vcmask (!%p1278_p3), 1048552   ;;  %v1591_v2 = vmov (!%p1278_p3), 0.0  }
  0x32   : > { %s1735_s29 = scalar_lea.vmem %s2242_s1, %s1275_s25  ;;  %s1740_s6 = scalar_lea.vmem %s2243_s2, %s1275_s25  ;;  %290 = vst.msk [vmem:[#allocation2] sm:$0xff] (!%p1278_p3), %vm289_vm0, %v1591_v2  ;;  %291 = vst.msk [vmem:[#allocation2 + $0x10] sm:$0xff] (!%p1278_p3), %vm289_vm0, %v1591_v2 }
  0x33   : > { %292 = vst.msk [vmem:[#allocation2 + $0x20] sm:$0xff] (!%p1278_p3), %vm289_vm0, %v1591_v2  ;;  %293 = vst.msk [vmem:[#allocation2 + $0x30] sm:$0xff] (!%p1278_p3), %vm289_vm0, %v1591_v2 }
  0x34   : > { %294 = vst.msk [vmem:[#allocation2 + $0x40] sm:$0xff] (!%p1278_p3), %vm289_vm0, %v1591_v2  ;;  %295 = vst.msk [vmem:[#allocation2 + $0x50] sm:$0xff] (!%p1278_p3), %vm289_vm0, %v1591_v2 }
  0x35   : > { %296 = vst.msk [vmem:[#allocation2 + $0x60] sm:$0xff] (!%p1278_p3), %vm289_vm0, %v1591_v2  ;;  %297 = vst.msk [vmem:[#allocation2 + $0x70] sm:$0xff] (!%p1278_p3), %vm289_vm0, %v1591_v2 }
  0x37 PF: > { %p1279_p4 = scmp.le.s32.totalorder %s1565_s15, 0 }
  0x38   : > { %v302_v3 = vld [vmem:[#allocation2 + $0x8] sm:$0xff] (!%p1279_p4)  ;;  %vm310_vm1 = vcmask (!%p1279_p4), 1048552   ;;  %v303_v4 = vld [vmem:[#allocation2 + $0x18] sm:$0xff] (!%p1279_p4) }
  0x39   : > { %301 = sbr.rel (%p1279_p4) target bundleno = 64 (0x40), region = 78  ;;  %v304_v5 = vld [vmem:[#allocation2 + $0x28] sm:$0xff] (!%p1279_p4)  ;;  %311 = vst.msk [vmem:[#allocation2] sm:$0xff] (!%p1279_p4), %vm310_vm1, %v302_v3  ;;  %312 = vst.msk [vmem:[#allocation2 + $0x10] sm:$0xff] (!%p1279_p4), %vm310_vm1, %v303_v4  ;;  %v305_v6 = vld [vmem:[#allocation2 + $0x38] sm:$0xff] (!%p1279_p4) }
  0x3a   : > { %313 = vst.msk [vmem:[#allocation2 + $0x20] sm:$0xff] (!%p1279_p4), %vm310_vm1, %v304_v5  ;;  %v306_v7 = vld [vmem:[#allocation2 + $0x48] sm:$0xff] (!%p1279_p4)  ;;  %v307_v8 = vld [vmem:[#allocation2 + $0x58] sm:$0xff] (!%p1279_p4)  ;;  %314 = vst.msk [vmem:[#allocation2 + $0x30] sm:$0xff] (!%p1279_p4), %vm310_vm1, %v305_v6 }
  0x3b   : > { %315 = vst.msk [vmem:[#allocation2 + $0x40] sm:$0xff] (!%p1279_p4), %vm310_vm1, %v306_v7  ;;  %316 = vst.msk [vmem:[#allocation2 + $0x50] sm:$0xff] (!%p1279_p4), %vm310_vm1, %v307_v8  ;;  %v308_v9 = vld [vmem:[#allocation2 + $0x68] sm:$0xff] (!%p1279_p4)  ;;  %v309_v10 = vld [vmem:[#allocation2 + $0x78] sm:$0xff] (!%p1279_p4) }
  0x3c   : > { %317 = vst.msk [vmem:[#allocation2 + $0x60] sm:$0xff] (!%p1279_p4), %vm310_vm1, %v308_v9  ;;  %318 = vst.msk [vmem:[#allocation2 + $0x70] sm:$0xff] (!%p1279_p4), %vm310_vm1, %v309_v10 }
  0x40 PF: > { %v1749_v11 = vld [vmem:[%s1740_s6 + $0x10] sm:$0xff]  ;;  %v1752_v12 = vld [vmem:[%s1735_s29] sm:$0xff]  ;;  %v1592_v13 = vmov 2   ;;  %v1593_v14 = vmov 0   ;;  %v1759_v15 = vld [vmem:[%s1740_s6 + $0x18] sm:$0xff]  ;;  %v1594_v34 = vmov 3  }
  0x41   : > { %1407 = vset.pattern.permute.xlu0 %v1592_v13  ;;  %1405 = vset.pattern.permute.xlu1 %v1593_v14  ;;  %v1762_v16 = vld [vmem:[%s1735_s29 + $0x18] sm:$0xff]  ;;  %v319_v17 = vld [vmem:[%s240_s7] sm:$0xff]  ;;  %v1771_v21 = vld [vmem:[%s1740_s6 + $0x28] sm:$0xff]  ;;  %v1595_v38 = vmov 1   ;;  %s1596_s10 = smov 127   ;;  %s1597_s11 = smov 126  }
  0x42   : > { %373 = vperm.xlu1 %1405, %v1749_v11   ;;  %627 = vperm.xlu0 %1407, %v1752_v12   ;;  %v321_v18 = vunpack.c.0.s8 %v319_v17  ;;  %v324_v19 = vunpack.c.3.s8 %v319_v17  ;;  %v320_v20 = vld [vmem:[%s240_s7 + $0x8] sm:$0xff]  ;;  %v322_v32 = vunpack.c.1.s8 %v319_v17  ;;  %v349_v36 = vld [vmem:[%s1735_s29 + $0x20] sm:$0xff]  ;;  %v351_v40 = vld [vmem:[%s1735_s29 + $0x30] sm:$0xff]  ;;  %v323_v43 = vunpack.c.2.s8 %v319_v17  ;;  %s1598_s25 = smov 125   ;;  %s1599_s24 = smov 3  }
  0x43   : > { %v1774_v22 = vld [vmem:[%s1735_s29 + $0x28] sm:$0xff]  ;;  %v326_v23 = vunpack.c.1.s8 %v320_v20  ;;  %v328_v27 = vunpack.c.3.s8 %v320_v20  ;;  %v1787_v28 = vld [vmem:[%s1740_s6 + $0x38] sm:$0xff]  ;;  %v325_v35 = vunpack.c.0.s8 %v320_v20  ;;  %v327_v39 = vunpack.c.2.s8 %v320_v20  ;;  %v347_v41 = vld [vmem:[%s1735_s29 + $0x10] sm:$0xff]  ;;  %s1304_s26 = smul.u32 6, %s1569_s16  ;;  %s1146_s7 = sshll.u32 %s1744_s8, 4  ;;  %s2178_s7 = int_to_ptr.vmem [resolvable:$true] %s1146_s7 }
  0x44   : > { %v1776_v24 = vcvt.s32.f32 %v321_v18  ;;  %v1778_v25 = vcvt.s32.f32 %v324_v19  ;;  %v1790_v29 = vld [vmem:[%s1735_s29 + $0x38] sm:$0xff]  ;;  %v346_v31 = vld [vmem:[%s1735_s29 + $0x8] sm:$0xff]  ;;  %v1799_v33 = vcvt.s32.f32 %v322_v32  ;;  %v1813_v44 = vld [vmem:[%s1740_s6] sm:$0xff]  ;;  %v1815_v45 = vcvt.s32.f32 %v323_v43  ;;  %s1305_s29 = smul.u32 18, %s1573_s17  ;;  %s2183_s16 = scalar_lea.sflag [#allocation5], %s238_s27 }
  0x45   : > { %v1780_v26 = vcvt.s32.f32 %v326_v23  ;;  %v1793_v30 = vcvt.s32.f32 %v328_v27  ;;  %v1803_v37 = vcvt.s32.f32 %v325_v35  ;;  %v1809_v42 = vcvt.s32.f32 %v327_v39  ;;  %v1822_v46 = vld [vmem:[%s1740_s6 + $0x8] sm:$0xff]  ;;  %v1827_v47 = vld [vmem:[%s1740_s6 + $0x20] sm:$0xff]  ;;  %v1832_v48 = vld [vmem:[%s1740_s6 + $0x30] sm:$0xff]  ;;  %s1141_s30 = sadd.s32 %s1565_s15, %s1304_s26  ;;  %s1479_s15 = scalar_lea.vmem %s2178_s7, 256 }
  0x46   : > { %378 = vperm.xlu1 %1405, %v1759_v15   ;;  %639 = vperm.xlu0 %1407, %v1762_v16   ;;  %337 = vst [vmem:[#allocation2 + $0x8] sm:$0xff] %v1776_v24  ;;  %340 = vst [vmem:[#allocation2 + $0x38] sm:$0xff] %v1778_v25  ;;  %v401_v49 = vld [vmem:[#allocation2] sm:$0xff]  ;;  %v1860_v59 = vld [vmem:[#allocation2 + $0x10] sm:$0xff]  ;;  %vm585_vm2 = vcmask 1039360   ;;  %vm722_vm3 = vcmask 1031168   ;;  %s1143_s5 = sadd.s32 %s1305_s29, %s1141_s30  ;;  %p1480_p5 = scmp.ne.s32.totalorder %s2178_s7, %s1479_s15 }
  0x47   : > { %342 = vst [vmem:[#allocation2 + $0x58] sm:$0xff] %v1780_v26  ;;  %344 = vst [vmem:[#allocation2 + $0x78] sm:$0xff] %v1793_v30  ;;  %v1886_v23 = vld [vmem:[#allocation2 + $0x20] sm:$0xff]  ;;  %v1900_v39 = vld [vmem:[#allocation2 + $0x30] sm:$0xff]  ;;  %vm1123_vm4 = vcmask 23552   ;;  %s1283_s6 = sshll.u32 %s1143_s5, 7 }
  0x48   : > { %338 = vst [vmem:[#allocation2 + $0x18] sm:$0xff] %v1799_v33  ;;  %341 = vst [vmem:[#allocation2 + $0x48] sm:$0xff] %v1803_v37  ;;  %p1481_p7 = pnand %p1480_p5, %p1692_p6  ;;  %s1600_s17 = smov [#allocation4]  }
  0x49   : > { %343 = vst [vmem:[#allocation2 + $0x68] sm:$0xff] %v1809_v42  ;;  %339 = vst [vmem:[#allocation2 + $0x28] sm:$0xff] %v1815_v45 }
  0x4a   : > { %388 = vperm.xlu1 %1405, %v1771_v21   ;;  %647 = vperm.xlu0 %1407, %v1774_v22   ;;  %p1482_p8 = pneg %p1481_p7 }
  0x4e   : > { %398 = vperm.xlu1 %1405, %v1787_v28   ;;  %655 = vperm.xlu0 %1407, %v1790_v29  }
  0x52   : > { %424 = vperm.xlu1 %1405, %v346_v31   ;;  %1410 = vset.pattern.permute.xlu0 %v1594_v34 }
  0x53   : > { %768 = vperm.xlu0 %1410, %v346_v31  }
  0x56   : > { %1406 = vset.pattern.permute.xlu1 %v1595_v38 }
  0x57   : > { %780 = vperm.xlu0 %1410, %v349_v36   ;;  %490 = vperm.xlu1 %1406, %v1752_v12  }
  0x5b   : > { %788 = vperm.xlu0 %1410, %v351_v40   ;;  %498 = vperm.xlu1 %1406, %v347_v41  }
  0x5f   : > { %1411 = vset.pattern.permute.xlu0 %v1593_v14  ;;  %502 = vperm.xlu1 %1406, %v1762_v16  }
  0x60   : > { %363 = vperm.xlu0 %1411, %v1813_v44  }
  0x63   : > { %510 = vperm.xlu1 %1406, %v1774_v22  }
  0x64   : > { %368 = vperm.xlu0 %1411, %v1822_v46  }
  0x67   : > { %518 = vperm.xlu1 %1406, %v1790_v29  }
  0x68   : > { %383 = vperm.xlu0 %1411, %v1827_v47  }
  0x6b   : > { %1408 = vset.pattern.permute.xlu1 %v1592_v13 }
  0x6c   : > { %393 = vperm.xlu0 %1411, %v1832_v48   ;;  %631 = vperm.xlu1 %1408, %v346_v31  }
  0x70   : > { %419 = vperm.xlu0 %1411, %v1752_v12   ;;  %635 = vperm.xlu1 %1408, %v347_v41  }
  0x74   : > { %429 = vperm.xlu0 %1411, %v347_v41   ;;  %643 = vperm.xlu1 %1408, %v349_v36  }
  0x78   : > { %434 = vperm.xlu0 %1411, %v1762_v16   ;;  %651 = vperm.xlu1 %1408, %v351_v40  }
  0x7c   : > { %449 = vperm.xlu0 %1411, %v351_v40   ;;  %1409 = vset.pattern.permute.xlu1 %v1594_v34 }
  0x7d   : > { %764 = vperm.xlu1 %1409, %v1752_v12  }
  0x80   : > { %1413 = vset.pattern.permute.xlu0 %v1595_v38 }
  0x81   : > { %494 = vperm.xlu0 %1413, %v346_v31   ;;  %772 = vperm.xlu1 %1409, %v347_v41  }
  0x85   : > { %506 = vperm.xlu0 %1413, %v349_v36   ;;  %776 = vperm.xlu1 %1409, %v1762_v16  }
  0x89   : > { %514 = vperm.xlu0 %1413, %v351_v40   ;;  %784 = vperm.xlu1 %1409, %v1774_v22  }
  0x8d   : > { %792 = vperm.xlu1 %1409, %v1790_v29  }
  0x91   : > { %1412 = vset.pattern.permute.xlu1 %v1593_v14 }
  0x92   : > { %439 = vperm.xlu1 %1412, %v349_v36  }
  0x96   : > { %444 = vperm.xlu1 %1412, %v1774_v22  }
  0x9a   : > { %454 = vperm.xlu1 %1412, %v1790_v29  }
  0x9e   : > { %1414 = vset.pattern.permute.xlu1 %v1595_v38 }
  0xc1   : > { %v1845_v50 = vpop.permute.xlu0 %627  ;;  %v374_v51 = vpop.permute.xlu1 %373 }
  0xc2   : > { %v1848_v52 = vmul.f32 %v1845_v50, %v401_v49 }
  0xc5   : > { %v1850_v53 = vpop.permute.xlu0 %639  ;;  %v379_v54 = vpop.permute.xlu1 %378 }
  0xc9   : > { %v1852_v55 = vpop.permute.xlu0 %647  ;;  %v1854_v56 = vpop.permute.xlu1 %388 }
  0xcd   : > { %v1856_v57 = vpop.permute.xlu0 %655  ;;  %v1858_v58 = vpop.permute.xlu1 %398 }
  0xd1   : > { %v425_v60 = vpop.permute.xlu1 %424 }
  0xd2   : > { %v459_v61 = vmul.f32 %v425_v60, %v1860_v59  ;;  %v1863_v62 = vpop.permute.xlu0 %768  ;;  %v460_v7 = vmul.f32 %v425_v60, %v1799_v33  ;;  %v1906_v60 = vld [vmem:[#allocation2 + $0x60] sm:$0xff] }
  0xd6   : > { %v1865_v63 = vpop.permute.xlu0 %780  ;;  %v491_v0 = vpop.permute.xlu1 %490 }
  0xd7   : > { %v521_v1 = vmul.f32 %v491_v0, %v401_v49  ;;  %v522_v2 = vmul.f32 %v491_v0, %v1776_v24 }
  0xd9   : > { %553 = vrot.lane.b32.xlu0 %v521_v1, %s1596_s10  ;;  %555 = vrot.lane.b32.xlu1 %v522_v2, %s1596_s10 }
  0xda   : > { %v1870_v3 = vpop.permute.xlu0 %788  ;;  %v499_v4 = vpop.permute.xlu1 %498 }
  0xde   : > { %v503_v5 = vpop.permute.xlu1 %502 }
  0xdf   : > { %v364_v6 = vpop.permute.xlu0 %363 }
  0xe2   : > { %v511_v8 = vpop.permute.xlu1 %510 }
  0xe3   : > { %v369_v9 = vpop.permute.xlu0 %368 }
  0xe4   : > { %v1873_v10 = vadd.f32 %v459_v61, %v369_v9  ;;  %v1875_v12 = vadd.f32 %v460_v7, %v369_v9 }
  0xe6   : > { %v1877_v13 = vpop.permute.xlu1 %518 }
  0xe7   : > { %v1879_v14 = vpop.permute.xlu0 %383 }
  0xeb   : > { %v394_v16 = vpop.permute.xlu0 %393  ;;  %v1881_v17 = vpop.permute.xlu1 %631 }
  0xef   : > { %v420_v18 = vpop.permute.xlu0 %419  ;;  %v1883_v19 = vpop.permute.xlu1 %635 }
  0xf0   : > { %v457_v20 = vmul.f32 %v420_v18, %v401_v49  ;;  %v458_v22 = vmul.f32 %v420_v18, %v1776_v24 }
  0xf2   : > { %v1888_v27 = vadd.f32 %v457_v20, %v364_v6  ;;  %v1890_v29 = vadd.f32 %v458_v22, %v364_v6 }
  0xf3   : > { %v430_v31 = vpop.permute.xlu0 %429  ;;  %v1892_v32 = vpop.permute.xlu1 %643 }
  0xf4   : > { %v461_v34 = vmul.f32 %v430_v31, %v1886_v23  ;;  %v462_v35 = vmul.f32 %v430_v31, %v1815_v45 }
  0xf6   : > { %v1896_v36 = vadd.f32 %v461_v34, %v374_v51  ;;  %v1898_v38 = vadd.f32 %v462_v35, %v374_v51  ;;  %v525_v34 = vmul.f32 %v499_v4, %v1886_v23  ;;  %v526_v35 = vmul.f32 %v499_v4, %v1815_v45 }
  0xf7   : > { %v435_v40 = vpop.permute.xlu0 %434  ;;  %v1902_v41 = vpop.permute.xlu1 %651 }
  0xf8   : > { %v463_v43 = vmul.f32 %v435_v40, %v1900_v39  ;;  %v464_v49 = vmul.f32 %v435_v40, %v1778_v25  ;;  %v527_v40 = vmul.f32 %v503_v5, %v1900_v39 }
  0xfa   : > { %v1908_v61 = vadd.f32 %v463_v43, %v379_v54  ;;  %v1910_v0 = vadd.f32 %v464_v49, %v379_v54  ;;  %v528_v43 = vmul.f32 %v503_v5, %v1778_v25  ;;  %v409_v49 = vld [vmem:[#allocation2 + $0x40] sm:$0xff]  ;;  %v532_v5 = vmul.f32 %v511_v8, %v1780_v26 }
  0xfb   : > { %v450_v1 = vpop.permute.xlu0 %449 }
  0xfc   : > { %v469_v2 = vmul.f32 %v450_v1, %v1906_v60  ;;  %v470_v51 = vmul.f32 %v450_v1, %v1809_v42  ;;  %v1914_v6 = vpop.permute.xlu1 %764 }
  0xfe   : > { %v1916_v7 = vadd.f32 %v469_v2, %v394_v16  ;;  %v1918_v9 = vadd.f32 %v470_v51, %v394_v16 }
 0x100   : > { %v495_v18 = vpop.permute.xlu0 %494  ;;  %v1920_v20 = vpop.permute.xlu1 %772 }
 0x101   : > { %v523_v22 = vmul.f32 %v495_v18, %v1860_v59  ;;  %v524_v31 = vmul.f32 %v495_v18, %v1799_v33  ;;  %v1943_v18 = vld [vmem:[#allocation2 + $0x50] sm:$0xff] }
 0x103   : > { %557 = vrot.lane.b32.xlu0 %v523_v22, %s1596_s10  ;;  %559 = vrot.lane.b32.xlu1 %v524_v31, %s1596_s10  ;;  %v531_v22 = vmul.f32 %v511_v8, %v1943_v18  ;;  %v1960_v8 = vld [vmem:[#allocation2 + $0x70] sm:$0xff] }
 0x104   : > { %v1926_v54 = vpop.permute.xlu1 %776  ;;  %v507_v1 = vpop.permute.xlu0 %506 }
 0x105   : > { %v529_v51 = vmul.f32 %v507_v1, %v409_v49  ;;  %v530_v4 = vmul.f32 %v507_v1, %v1803_v37 }
 0x107   : > { %561 = vrot.lane.b32.xlu0 %v525_v34, %s1596_s10  ;;  %563 = vrot.lane.b32.xlu1 %v526_v35, %s1596_s10 }
 0x108   : > { %v1932_v16 = vpop.permute.xlu1 %784  ;;  %v515_v34 = vpop.permute.xlu0 %514 }
 0x10b   : > { %565 = vrot.lane.b32.xlu0 %v527_v40, %s1596_s10  ;;  %567 = vrot.lane.b32.xlu1 %v528_v43, %s1596_s10 }
 0x10c   : > { %v1938_v2 = vpop.permute.xlu1 %792 }
 0x10f   : > { %569 = vrot.lane.b32.xlu0 %v529_v51, %s1596_s10  ;;  %571 = vrot.lane.b32.xlu1 %v530_v4, %s1596_s10  ;;  %v533_v51 = vmul.f32 %v515_v34, %v1906_v60  ;;  %v534_v4 = vmul.f32 %v515_v34, %v1809_v42  ;;  %v661_v34 = vmul.f32 %v1881_v17, %v1799_v33 }
 0x111   : > { %v440_v31 = vpop.permute.xlu1 %439 }
 0x112   : > { %v465_v35 = vmul.f32 %v440_v31, %v409_v49  ;;  %v466_v40 = vmul.f32 %v440_v31, %v1803_v37  ;;  %v660_v31 = vmul.f32 %v1881_v17, %v1860_v59  ;;  %v665_v59 = vmul.f32 %v1850_v53, %v1778_v25 }
 0x113   : > { %573 = vrot.lane.b32.xlu0 %v531_v22, %s1596_s10  ;;  %575 = vrot.lane.b32.xlu1 %v532_v5, %s1596_s10  ;;  %v535_v22 = vmul.f32 %v1877_v13, %v1960_v8  ;;  %v536_v5 = vmul.f32 %v1877_v13, %v1793_v30  ;;  %v662_v13 = vmul.f32 %v1883_v19, %v1886_v23 }
 0x114   : > { %v1951_v43 = vadd.f32 %v465_v35, %v1879_v14  ;;  %v1954_v1 = vadd.f32 %v466_v40, %v1879_v14  ;;  %v659_v14 = vmul.f32 %v1845_v50, %v1776_v24  ;;  %v663_v35 = vmul.f32 %v1883_v19, %v1815_v45 }
 0x115   : > { %v664_v50 = vmul.f32 %v1850_v53, %v1900_v39  ;;  %v667_v17 = vmul.f32 %v1892_v32, %v1803_v37  ;;  %v668_v19 = vmul.f32 %v1852_v55, %v1943_v18  ;;  %v669_v23 = vmul.f32 %v1852_v55, %v1780_v26 }
 0x116   : > { %v670_v53 = vmul.f32 %v1902_v41, %v1906_v60  ;;  %v671_v39 = vmul.f32 %v1902_v41, %v1809_v42  ;;  %v796_v55 = vmul.f32 %v1863_v62, %v1799_v33  ;;  %v795_v40 = vmul.f32 %v1914_v6, %v1776_v24 }
 0x117   : > { %577 = vrot.lane.b32.xlu0 %v533_v51, %s1596_s10  ;;  %579 = vrot.lane.b32.xlu1 %v534_v4, %s1596_s10  ;;  %v797_v41 = vmul.f32 %v1920_v20, %v1815_v45  ;;  %v798_v60 = vmul.f32 %v1926_v54, %v1778_v25  ;;  %v445_v51 = vpop.permute.xlu1 %444  ;;  %v800_v33 = vmul.f32 %v1932_v16, %v1780_v26 }
 0x118   : > { %v801_v24 = vmul.f32 %v1870_v3, %v1809_v42  ;;  %v802_v45 = vmul.f32 %v1938_v2, %v1793_v30 }
 0x11b   : > { %581 = vrot.lane.b32.xlu0 %v535_v22, %s1596_s10  ;;  %583 = vrot.lane.b32.xlu1 %v536_v5, %s1596_s10  ;;  %v455_v62 = vpop.permute.xlu1 %454 }
 0x11f   : > { %690 = vrot.lane.b32.xlu0 %v1848_v52, %s1597_s11  ;;  %692 = vrot.lane.b32.xlu1 %v659_v14, %s1597_s11  ;;  %v666_v52 = vmul.f32 %v1892_v32, %v409_v49  ;;  %v672_v32 = vmul.f32 %v1856_v57, %v1960_v8  ;;  %v673_v49 = vmul.f32 %v1856_v57, %v1793_v30 }
 0x120   : > { %v799_v57 = vmul.f32 %v1865_v63, %v1803_v37 }
 0x123   : > { %694 = vrot.lane.b32.xlu0 %v660_v31, %s1597_s11  ;;  %696 = vrot.lane.b32.xlu1 %v661_v34, %s1597_s11 }
 0x127   : > { %698 = vrot.lane.b32.xlu0 %v662_v13, %s1597_s11  ;;  %700 = vrot.lane.b32.xlu1 %v663_v35, %s1597_s11 }
 0x12b   : > { %702 = vrot.lane.b32.xlu0 %v664_v50, %s1597_s11  ;;  %704 = vrot.lane.b32.xlu1 %v665_v59, %s1597_s11 }
 0x12f   : > { %706 = vrot.lane.b32.xlu0 %v666_v52, %s1597_s11  ;;  %708 = vrot.lane.b32.xlu1 %v667_v17, %s1597_s11 }
 0x133   : > { %710 = vrot.lane.b32.xlu0 %v668_v19, %s1597_s11  ;;  %712 = vrot.lane.b32.xlu1 %v669_v23, %s1597_s11  ;;  %v467_v23 = vmul.f32 %v445_v51, %v1943_v18 }
 0x137   : > { %714 = vrot.lane.b32.xlu0 %v670_v53, %s1597_s11  ;;  %716 = vrot.lane.b32.xlu1 %v671_v39, %s1597_s11  ;;  %v471_v53 = vmul.f32 %v455_v62, %v1960_v8  ;;  %v472_v39 = vmul.f32 %v455_v62, %v1793_v30 }
 0x13b   : > { %718 = vrot.lane.b32.xlu0 %v672_v32, %s1597_s11  ;;  %720 = vrot.lane.b32.xlu1 %v673_v49, %s1597_s11 }
 0x13f   : > { %811 = vrot.lane.b32.xlu0 %v795_v40, %s1598_s25  ;;  %813 = vrot.lane.b32.xlu1 %v796_v55, %s1598_s25 }
 0x143   : > { %815 = vrot.lane.b32.xlu0 %v797_v41, %s1598_s25  ;;  %817 = vrot.lane.b32.xlu1 %v798_v60, %s1598_s25  ;;  %v483_v41 = vadd.f32 %v467_v23, %v1854_v56  ;;  %v2047_v60 = vadd.f32 %v471_v53, %v1858_v58 }
 0x147   : > { %819 = vrot.lane.b32.xlu0 %v799_v57, %s1598_s25  ;;  %821 = vrot.lane.b32.xlu1 %v800_v33, %s1598_s25 }
 0x14b   : > { %823 = vrot.lane.b32.xlu0 %v801_v24, %s1598_s25  ;;  %825 = vrot.lane.b32.xlu1 %v802_v45, %s1598_s25  ;;  %v556_v25 = vpop.permute.xlu1 %555  ;;  %v554_v37 = vpop.permute.xlu0 %553  ;;  %s2176_s25 = scalar_lea.hbm %s2244_s3, %s1283_s6 }
 0x14c   : > { %v2015_v6 = vadd.f32 %v556_v25, %v1890_v29  ;;  %v586_v32 = vsel %vm585_vm2, %v554_v37, %v556_v25 }
 0x14d   : > { %v610_v8 = vadd.f32 %v586_v32, %v1888_v27 }
 0x14f   : > { %964 = vperm.xlu0 %1413, %v1813_v44   ;;  %968 = vperm.xlu1 %1414, %v1822_v46   ;;  %v468_v46 = vmul.f32 %v445_v51, %v1780_v26  ;;  %v2054_v51 = vadd.f32 %v472_v39, %v1858_v58 }
 0x153   : > { %976 = vperm.xlu0 %1413, %v1759_v15   ;;  %972 = vperm.xlu1 %1414, %v1749_v11  }
 0x157   : > { %984 = vperm.xlu0 %1413, %v1771_v21   ;;  %980 = vperm.xlu1 %1414, %v1827_v47  }
 0x15b   : > { %992 = vperm.xlu0 %1413, %v1787_v28   ;;  %988 = vperm.xlu1 %1414, %v1832_v48   ;;  %v484_v48 = vadd.f32 %v468_v46, %v1854_v56 }
 0x175   : > { %v558_v42 = vpop.permute.xlu0 %557  ;;  %v560_v63 = vpop.permute.xlu1 %559 }
 0x176   : > { %v587_v40 = vsel %vm585_vm2, %v558_v42, %v560_v63  ;;  %v613_v56 = vadd.f32 %v560_v63, %v1875_v12 }
 0x177   : > { %v612_v62 = vadd.f32 %v587_v40, %v1873_v10 }
 0x179   : > { %v562_v3 = vpop.permute.xlu0 %561  ;;  %v564_v29 = vpop.permute.xlu1 %563 }
 0x17a   : > { %v588_v57 = vsel %vm585_vm2, %v562_v3, %v564_v29  ;;  %v615_v24 = vadd.f32 %v564_v29, %v1898_v38 }
 0x17b   : > { %v614_v27 = vadd.f32 %v588_v57, %v1896_v36 }
 0x17d   : > { %v566_v44 = vpop.permute.xlu0 %565  ;;  %v568_v20 = vpop.permute.xlu1 %567 }
 0x17e   : > { %v589_v18 = vsel %vm585_vm2, %v566_v44, %v568_v20  ;;  %v617_v58 = vadd.f32 %v568_v20, %v1910_v0 }
 0x17f   : > { %v616_v42 = vadd.f32 %v589_v18, %v1908_v61 }
 0x181   : > { %v570_v15 = vpop.permute.xlu0 %569  ;;  %v572_v11 = vpop.permute.xlu1 %571 }
 0x182   : > { %v590_v21 = vsel %vm585_vm2, %v570_v15, %v572_v11  ;;  %v2028_v47 = vadd.f32 %v572_v11, %v1954_v1 }
 0x183   : > { %v2031_v28 = vadd.f32 %v590_v21, %v1951_v43 }
 0x185   : > { %v574_v54 = vpop.permute.xlu0 %573  ;;  %v576_v16 = vpop.permute.xlu1 %575 }
 0x186   : > { %v2034_v2 = vadd.f32 %v576_v16, %v484_v48  ;;  %v591_v30 = vsel %vm585_vm2, %v574_v54, %v576_v16 }
 0x187   : > { %v620_v44 = vadd.f32 %v591_v30, %v483_v41 }
 0x189   : > { %v578_v4 = vpop.permute.xlu0 %577  ;;  %v580_v22 = vpop.permute.xlu1 %579 }
 0x18a   : > { %v592_v3 = vsel %vm585_vm2, %v578_v4, %v580_v22  ;;  %v2070_v10 = vadd.f32 %v580_v22, %v1918_v9 }
 0x18b   : > { %v2076_v36 = vadd.f32 %v592_v3, %v1916_v7 }
 0x18d   : > { %v582_v26 = vpop.permute.xlu0 %581  ;;  %v2036_v5 = vpop.permute.xlu1 %583 }
 0x18e   : > { %v2080_v61 = vsel %vm585_vm2, %v582_v26, %v2036_v5 }
 0x191   : > { %v691_v14 = vpop.permute.xlu0 %690  ;;  %v693_v31 = vpop.permute.xlu1 %692 }
 0x192   : > { %v723_v33 = vsel %vm722_vm3, %v691_v14, %v693_v31  ;;  %v748_v38 = vadd.f32 %v693_v31, %v2015_v6 }
 0x193   : > { %v747_v12 = vadd.f32 %v723_v33, %v610_v8 }
 0x195   : > { %v695_v34 = vpop.permute.xlu0 %694  ;;  %v697_v13 = vpop.permute.xlu1 %696 }
 0x196   : > { %v724_v45 = vsel %vm722_vm3, %v695_v34, %v697_v13  ;;  %v750_v29 = vadd.f32 %v697_v13, %v613_v56 }
 0x197   : > { %v749_v63 = vadd.f32 %v724_v45, %v612_v62 }
 0x199   : > { %v699_v1 = vpop.permute.xlu0 %698  ;;  %v701_v35 = vpop.permute.xlu1 %700 }
 0x19a   : > { %v725_v46 = vsel %vm722_vm3, %v699_v1, %v701_v35  ;;  %v752_v16 = vadd.f32 %v701_v35, %v615_v24 }
 0x19b   : > { %v751_v7 = vadd.f32 %v725_v46, %v614_v27 }
 0x19d   : > { %v703_v50 = vpop.permute.xlu0 %702  ;;  %v705_v43 = vpop.permute.xlu1 %704 }
 0x19e   : > { %v726_v15 = vsel %vm722_vm3, %v703_v50, %v705_v43  ;;  %v754_v22 = vadd.f32 %v705_v43, %v617_v58 }
 0x19f   : > { %v753_v4 = vadd.f32 %v726_v15, %v616_v42 }
 0x1a1   : > { %v707_v59 = vpop.permute.xlu0 %706  ;;  %v709_v52 = vpop.permute.xlu1 %708 }
 0x1a2   : > { %v727_v0 = vsel %vm722_vm3, %v707_v59, %v709_v52  ;;  %v756_v1 = vadd.f32 %v709_v52, %v2028_v47 }
 0x1a3   : > { %v755_v13 = vadd.f32 %v727_v0, %v2031_v28 }
 0x1a5   : > { %v711_v17 = vpop.permute.xlu0 %710  ;;  %v713_v19 = vpop.permute.xlu1 %712 }
 0x1a6   : > { %v728_v9 = vsel %vm722_vm3, %v711_v17, %v713_v19  ;;  %v758_v59 = vadd.f32 %v713_v19, %v2034_v2 }
 0x1a7   : > { %v757_v50 = vadd.f32 %v728_v9, %v620_v44  ;;  %v625_v9 = vadd.f32 %v2036_v5, %v2054_v51 }
 0x1a9   : > { %v715_v49 = vpop.permute.xlu0 %714  ;;  %v2042_v55 = vpop.permute.xlu1 %716 }
 0x1aa   : > { %v729_v47 = vsel %vm722_vm3, %v715_v49, %v2042_v55  ;;  %v760_v51 = vadd.f32 %v2042_v55, %v2070_v10 }
 0x1ad   : > { %v2061_v25 = vpop.permute.xlu0 %718  ;;  %v2063_v37 = vpop.permute.xlu1 %720 }
 0x1b1   : > { %v812_v20 = vpop.permute.xlu0 %811  ;;  %v814_v11 = vpop.permute.xlu1 %813 }
 0x1b2   : > { %v2084_v6 = vadd.f32 %v812_v20, %v747_v12  ;;  %v2086_v21 = vadd.f32 %v812_v20, %v748_v38  ;;  %v2088_v48 = vadd.f32 %v814_v11, %v749_v63  ;;  %v2090_v54 = vadd.f32 %v814_v11, %v750_v29 }
 0x1b3   : > { %v759_v20 = vadd.f32 %v729_v47, %v2076_v36 }
 0x1b4   : > { %v851_v26 = vsub.f32 0.0, %v2084_v6  ;;  %v852_v14 = vsub.f32 0.0, %v2086_v21  ;;  %v853_v31 = vsub.f32 0.0, %v2088_v48  ;;  %v854_v34 = vsub.f32 0.0, %v2090_v54 }
 0x1b5   : > { %v816_v17 = vpop.permute.xlu0 %815  ;;  %v818_v23 = vpop.permute.xlu1 %817 }
 0x1b6   : > { %v867_v35 = vmin.f32 %v851_v26, 80.0  ;;  %v868_v53 = vmin.f32 %v852_v14, 80.0  ;;  %v869_v43 = vmin.f32 %v853_v31, 80.0  ;;  %v870_v39 = vmin.f32 %v854_v34, 80.0 }
 0x1b7   : > { %v2099_v32 = vadd.f32 %v816_v17, %v751_v7  ;;  %v2101_v40 = vadd.f32 %v816_v17, %v752_v16  ;;  %v2103_v41 = vadd.f32 %v818_v23, %v753_v4  ;;  %v2105_v57 = vadd.f32 %v818_v23, %v754_v22 }
 0x1b8   : > { %v883_v28 = vmul.f32 1.442695, %v867_v35  ;;  %v885_v52 = vmul.f32 1.442695, %v868_v53  ;;  %v887_v2 = vmul.f32 1.442695, %v869_v43  ;;  %v730_v16 = vsel %vm722_vm3, %v2061_v25, %v2063_v37 }
 0x1b9   : > { %v889_v19 = vmul.f32 1.442695, %v870_v39  ;;  %v855_v18 = vsub.f32 0.0, %v2099_v32  ;;  %v856_v8 = vsub.f32 0.0, %v2101_v40  ;;  %v857_v30 = vsub.f32 0.0, %v2103_v41  ;;  %v820_v33 = vpop.permute.xlu0 %819  ;;  %v822_v42 = vpop.permute.xlu1 %821 }
 0x1ba   : > { %1415 = vpow2.f32 %v883_v28  ;;  %v858_v62 = vsub.f32 0.0, %v2105_v57  ;;  %v2113_v56 = vadd.f32 %v820_v33, %v755_v13  ;;  %v2115_v24 = vadd.f32 %v820_v33, %v756_v1 }
 0x1bb   : > { %1417 = vpow2.f32 %v885_v52  ;;  %v871_v49 = vmin.f32 %v855_v18, 80.0  ;;  %v872_v45 = vmin.f32 %v856_v8, 80.0  ;;  %v873_v27 = vmin.f32 %v857_v30, 80.0 }
 0x1bc   : > { %1419 = vpow2.f32 %v887_v2  ;;  %v874_v58 = vmin.f32 %v858_v62, 80.0  ;;  %v859_v3 = vsub.f32 0.0, %v2113_v56  ;;  %v860_v44 = vsub.f32 0.0, %v2115_v24 }
 0x1bd   : > { %1421 = vpow2.f32 %v889_v19  ;;  %v891_v12 = vmul.f32 1.442695, %v871_v49  ;;  %v893_v38 = vmul.f32 1.442695, %v872_v45  ;;  %v895_v63 = vmul.f32 1.442695, %v873_v27  ;;  %v824_v7 = vpop.permute.xlu0 %823  ;;  %v826_v34 = vpop.permute.xlu1 %825 }
 0x1be   : > { %v897_v29 = vmul.f32 1.442695, %v874_v58  ;;  %v875_v46 = vmin.f32 %v859_v3, 80.0  ;;  %v876_v15 = vmin.f32 %v860_v44, 80.0  ;;  %v2119_v0 = vadd.f32 %v822_v42, %v757_v50 }
 0x1bf   : > { %1423 = vpow2.f32 %v891_v12  ;;  %v2124_v11 = vadd.f32 %v822_v42, %v758_v59  ;;  %v624_v26 = vadd.f32 %v2080_v61, %v2047_v60  ;;  %v2135_v31 = vadd.f32 %v824_v7, %v759_v20 }
 0x1c0   : > { %1425 = vpow2.f32 %v893_v38  ;;  %v899_v4 = vmul.f32 1.442695, %v875_v46  ;;  %v861_v22 = vsub.f32 0.0, %v2119_v0  ;;  %v901_v14 = vmul.f32 1.442695, %v876_v15 }
 0x1c1   : > { %1427 = vpow2.f32 %v895_v63  ;;  %v862_v5 = vsub.f32 0.0, %v2124_v11  ;;  %v761_v25 = vadd.f32 %v730_v16, %v624_v26  ;;  %v762_v50 = vadd.f32 %v2063_v37, %v625_v9 }
 0x1c2   : > { %1429 = vpow2.f32 %v897_v29  ;;  %v877_v36 = vmin.f32 %v861_v22, 80.0  ;;  %v2138_v60 = vadd.f32 %v824_v7, %v760_v51  ;;  %v863_v35 = vsub.f32 0.0, %v2135_v31 }
 0x1c3   : > { %1431 = vpow2.f32 %v899_v4  ;;  %v878_v13 = vmin.f32 %v862_v5, 80.0  ;;  %v2140_v23 = vadd.f32 %v826_v34, %v761_v25  ;;  %v2143_v53 = vadd.f32 %v826_v34, %v762_v50 }
 0x1c4   : > { %v1416_v1 = vpop.eup %1415  ;;  %v903_v59 = vmul.f32 1.442695, %v877_v36  ;;  %1433 = vpow2.f32 %v901_v14  ;;  %v864_v28 = vsub.f32 0.0, %v2138_v60  ;;  %v879_v8 = vmin.f32 %v863_v35, 80.0 }
 0x1c5   : > { %v1418_v61 = vpop.eup %1417  ;;  %v915_v17 = vadd.f32 1.0, %v1416_v1  ;;  %v905_v47 = vmul.f32 1.442695, %v878_v13  ;;  %v865_v2 = vsub.f32 0.0, %v2140_v23  ;;  %v866_v30 = vsub.f32 0.0, %v2143_v53 }
 0x1c6   : > { %v1420_v55 = vpop.eup %1419  ;;  %v916_v10 = vadd.f32 1.0, %v1418_v61  ;;  %1435 = vpow2.f32 %v903_v59  ;;  %v880_v27 = vmin.f32 %v864_v28, 80.0  ;;  %v907_v12 = vmul.f32 1.442695, %v879_v8 }
 0x1c7   : > { %v1422_v43 = vpop.eup %1421  ;;  %1437 = vrcp.f32 %v915_v17  ;;  %v917_v39 = vadd.f32 1.0, %v1420_v55  ;;  %v881_v3 = vmin.f32 %v865_v2, 80.0  ;;  %v882_v38 = vmin.f32 %v866_v30, 80.0 }
 0x1c8   : > { %1439 = vrcp.f32 %v916_v10  ;;  %v918_v37 = vadd.f32 1.0, %v1422_v43  ;;  %v909_v46 = vmul.f32 1.442695, %v880_v27 }
 0x1c9   : > { %v1424_v52 = vpop.eup %1423  ;;  %1441 = vrcp.f32 %v917_v39  ;;  %v911_v20 = vmul.f32 1.442695, %v881_v3  ;;  %v913_v16 = vmul.f32 1.442695, %v882_v38 }
 0x1ca   : > { %v1426_v19 = vpop.eup %1425  ;;  %1443 = vrcp.f32 %v918_v37  ;;  %v919_v18 = vadd.f32 1.0, %v1424_v52 }
 0x1cb   : > { %v1428_v33 = vpop.eup %1427  ;;  %v920_v62 = vadd.f32 1.0, %v1426_v19  ;;  %1445 = vpow2.f32 %v905_v47 }
 0x1cc   : > { %v1430_v49 = vpop.eup %1429  ;;  %1447 = vrcp.f32 %v919_v18  ;;  %v921_v45 = vadd.f32 1.0, %v1428_v33 }
 0x1cd   : > { %v1432_v42 = vpop.eup %1431  ;;  %1449 = vrcp.f32 %v920_v62  ;;  %v922_v58 = vadd.f32 1.0, %v1430_v49 }
 0x1ce   : > { %1451 = vrcp.f32 %v921_v45  ;;  %v923_v44 = vadd.f32 1.0, %v1432_v42  ;;  %v1434_v63 = vpop.eup %1433  ;;  %v969_v22 = vpop.permute.xlu1 %968 }
 0x1cf   : > { %1453 = vrcp.f32 %v922_v58  ;;  %v924_v14 = vadd.f32 1.0, %v1434_v63  ;;  %v965_v5 = vpop.permute.xlu0 %964 }
 0x1d0   : > { %v1436_v29 = vpop.eup %1435  ;;  %1455 = vrcp.f32 %v923_v44 }
 0x1d1   : > { %v1438_v15 = vpop.eup %1437  ;;  %v925_v9 = vadd.f32 1.0, %v1436_v29  ;;  %1457 = vpow2.f32 %v907_v12 }
 0x1d2   : > { %v1440_v7 = vpop.eup %1439  ;;  %v947_v4 = vmul.f32 %v1438_v15, %v2084_v6  ;;  %v973_v37 = vpop.permute.xlu1 %972 }
 0x1d3   : > { %v1442_v26 = vpop.eup %1441  ;;  %1459 = vrcp.f32 %v925_v9  ;;  %v948_v51 = vmul.f32 %v1440_v7, %v2086_v21  ;;  %v977_v30 = vpop.permute.xlu0 %976 }
 0x1d4   : > { %v1444_v36 = vpop.eup %1443  ;;  %1461 = vpow2.f32 %v909_v46  ;;  %v995_v34 = vmul.f32 %v965_v5, %v947_v4  ;;  %v949_v25 = vmul.f32 %v1442_v26, %v2088_v48 }
 0x1d5   : > { %v1446_v13 = vpop.eup %1445  ;;  %1463 = vpow2.f32 %v911_v20  ;;  %v996_v1 = vmul.f32 %v965_v5, %v948_v51  ;;  %v950_v50 = vmul.f32 %v1444_v36, %v2090_v54 }
 0x1d6   : > { %v1448_v59 = vpop.eup %1447  ;;  %v926_v61 = vadd.f32 1.0, %v1446_v13  ;;  %1465 = vpow2.f32 %v913_v16  ;;  %v1288_v6 = vround.rtne.f32 %v995_v34  ;;  %v997_v17 = vmul.f32 %v969_v22, %v949_v25 }
 0x1d7   : > { %v1450_v55 = vpop.eup %1449  ;;  %1467 = vrcp.f32 %v924_v14  ;;  %v1289_v10 = vround.rtne.f32 %v996_v1  ;;  %v998_v35 = vmul.f32 %v969_v22, %v950_v50  ;;  %v951_v21 = vmul.f32 %v1448_v59, %v2099_v32 }
 0x1d8   : > { %v1452_v43 = vpop.eup %1451  ;;  %1469 = vrcp.f32 %v926_v61  ;;  %v1027_v39 = vmax.f32 %v1288_v6, -128.0  ;;  %v1290_v48 = vround.rtne.f32 %v997_v17  ;;  %v952_v47 = vmul.f32 %v1450_v55, %v2101_v40 }
 0x1d9   : > { %v1454_v28 = vpop.eup %1453  ;;  %v1028_v54 = vmax.f32 %v1289_v10, -128.0  ;;  %v1291_v52 = vround.rtne.f32 %v998_v35  ;;  %v953_v2 = vmul.f32 %v1452_v43, %v2103_v41  ;;  %v999_v19 = vmul.f32 %v973_v37, %v951_v21 }
 0x1da   : > { %v1043_v18 = vmin.f32 %v1027_v39, 127.0  ;;  %v1029_v8 = vmax.f32 %v1290_v48, -128.0  ;;  %v954_v33 = vmul.f32 %v1454_v28, %v2105_v57  ;;  %v1000_v62 = vmul.f32 %v973_v37, %v952_v47  ;;  %v1456_v32 = vpop.eup %1455  ;;  %v985_v39 = vpop.permute.xlu0 %984 }
 0x1db   : > { %v1044_v49 = vmin.f32 %v1028_v54, 127.0  ;;  %v1030_v45 = vmax.f32 %v1291_v52, -128.0  ;;  %v1001_v27 = vmul.f32 %v977_v30, %v953_v2  ;;  %v1292_v42 = vround.rtne.f32 %v999_v19  ;;  %v1458_v58 = vpop.eup %1457  ;;  %v981_v52 = vpop.permute.xlu1 %980 }
 0x1dc   : > { %v1059_v40 = vtrunc.f32 %v1043_v18  ;;  %v1045_v3 = vmin.f32 %v1029_v8, 127.0  ;;  %v1002_v44 = vmul.f32 %v977_v30, %v954_v33  ;;  %v1293_v12 = vround.rtne.f32 %v1000_v62 }
 0x1dd   : > { %v1460_v38 = vpop.eup %1459  ;;  %v927_v63 = vadd.f32 1.0, %v1458_v58  ;;  %v1060_v41 = vtrunc.f32 %v1044_v49  ;;  %v1046_v29 = vmin.f32 %v1030_v45, 127.0  ;;  %v1294_v46 = vround.rtne.f32 %v1001_v27 }
 0x1de   : > { %v1462_v15 = vpop.eup %1461  ;;  %v1061_v9 = vtrunc.f32 %v1045_v3  ;;  %v1295_v20 = vround.rtne.f32 %v1002_v44  ;;  %v1031_v57 = vmax.f32 %v1292_v42, -128.0  ;;  %v1032_v7 = vmax.f32 %v1293_v12, -128.0 }
 0x1df   : > { %v1464_v16 = vpop.eup %1463  ;;  %v928_v4 = vadd.f32 1.0, %v1462_v15  ;;  %1471 = vrcp.f32 %v927_v63  ;;  %v1062_v22 = vtrunc.f32 %v1046_v29  ;;  %v1033_v26 = vmax.f32 %v1294_v46, -128.0  ;;  %v989_v3 = vpop.permute.xlu1 %988 }
 0x1e0   : > { %v1466_v14 = vpop.eup %1465  ;;  %v929_v5 = vadd.f32 1.0, %v1464_v16  ;;  %v1075_v51 = vpack.c.f32.eXmY %v1059_v40, %v1061_v9, 312  ;;  %v1034_v36 = vmax.f32 %v1295_v20, -128.0  ;;  %v1047_v34 = vmin.f32 %v1031_v57, 127.0 }
 0x1e1   : > { %v1468_v25 = vpop.eup %1467  ;;  %1473 = vrcp.f32 %v928_v4  ;;  %v930_v13 = vadd.f32 1.0, %v1466_v14  ;;  %v1085_v1 = vpack.c.f32.eXmY %v1060_v41, %v1062_v22, 312  ;;  %v1049_v50 = vmin.f32 %v1033_v26, 127.0 }
 0x1e2   : > { %v1470_v59 = vpop.eup %1469  ;;  %1475 = vrcp.f32 %v929_v5  ;;  %v1050_v61 = vmin.f32 %v1034_v36, 127.0  ;;  %v1048_v6 = vmin.f32 %v1032_v7, 127.0  ;;  %v1063_v17 = vtrunc.f32 %v1047_v34 }
 0x1e3   : > { %1477 = vrcp.f32 %v930_v13  ;;  %v1065_v55 = vtrunc.f32 %v1049_v50  ;;  %v957_v10 = vmul.f32 %v1460_v38, %v2119_v0  ;;  %v958_v35 = vmul.f32 %v1470_v59, %v2124_v11 }
 0x1e4   : > { %v1066_v21 = vtrunc.f32 %v1050_v61  ;;  %v1064_v43 = vtrunc.f32 %v1048_v6  ;;  %v955_v48 = vmul.f32 %v1456_v32, %v2113_v56  ;;  %v956_v47 = vmul.f32 %v1468_v25, %v2115_v24 }
 0x1e5   : > { %v1079_v37 = vpack.c.f32.eXmY %v1063_v17, %v1065_v55, 312  ;;  %v1005_v28 = vmul.f32 %v985_v39, %v957_v10  ;;  %v1006_v54 = vmul.f32 %v985_v39, %v958_v35 }
 0x1e6   : > { %v1089_v2 = vpack.c.f32.eXmY %v1064_v43, %v1066_v21, 312  ;;  %v1003_v19 = vmul.f32 %v981_v52, %v955_v48  ;;  %v1004_v18 = vmul.f32 %v981_v52, %v956_v47 }
 0x1e7   : > { %v1298_v8 = vround.rtne.f32 %v1005_v28  ;;  %v1299_v30 = vround.rtne.f32 %v1006_v54  ;;  %v1083_v33 = vpack.c.b8 %v1079_v37, %v1075_v51 }
 0x1e8   : > { %v1296_v0 = vround.rtne.f32 %v1003_v19  ;;  %v1297_v62 = vround.rtne.f32 %v1004_v18  ;;  %v1093_v11 = vpack.c.b8 %v1089_v2, %v1085_v1 }
 0x1e9   : > { %v1472_v49 = vpop.eup %1471  ;;  %v1037_v45 = vmax.f32 %v1298_v8, -128.0  ;;  %v1038_v27 = vmax.f32 %v1299_v30, -128.0  ;;  %1115 = vrot.lane.b32.xlu1 %v1083_v33, %s1599_s24 }
 0x1ea   : > { %v1035_v56 = vmax.f32 %v1296_v0, -128.0  ;;  %v1036_v24 = vmax.f32 %v1297_v62, -128.0  ;;  %v959_v32 = vmul.f32 %v1472_v49, %v2135_v31  ;;  %1117 = vrot.lane.b32.xlu0 %v1093_v11, %s1599_s24  ;;  %v993_v31 = vpop.permute.xlu0 %992 }
 0x1eb   : > { %v1474_v42 = vpop.eup %1473  ;;  %v1053_v58 = vmin.f32 %v1037_v45, 127.0  ;;  %v1054_v40 = vmin.f32 %v1038_v27, 127.0 }
 0x1ec   : > { %v1476_v44 = vpop.eup %1475  ;;  %v1051_v12 = vmin.f32 %v1035_v56, 127.0  ;;  %v1052_v38 = vmin.f32 %v1036_v24, 127.0  ;;  %v960_v63 = vmul.f32 %v1474_v42, %v2138_v60  ;;  %v1007_v41 = vmul.f32 %v989_v3, %v959_v32 }
 0x1ed   : > { %v1478_v29 = vpop.eup %1477  ;;  %v1069_v46 = vtrunc.f32 %v1053_v58  ;;  %v1070_v15 = vtrunc.f32 %v1054_v40  ;;  %v961_v9 = vmul.f32 %v1476_v44, %v2140_v23 }
 0x1ee   : > { %v1067_v20 = vtrunc.f32 %v1051_v12  ;;  %v1068_v57 = vtrunc.f32 %v1052_v38  ;;  %v962_v7 = vmul.f32 %v1478_v29, %v2143_v53  ;;  %v1008_v16 = vmul.f32 %v989_v3, %v960_v63 }
 0x1ef   : > { %v1009_v4 = vmul.f32 %v993_v31, %v961_v9  ;;  %v1300_v22 = vround.rtne.f32 %v1007_v41 }
 0x1f0   : > { %v1095_v26 = vpack.c.f32.eXmY %v1067_v20, %v1069_v46, 312  ;;  %v1105_v14 = vpack.c.f32.eXmY %v1068_v57, %v1070_v15, 312  ;;  %v1010_v5 = vmul.f32 %v993_v31, %v962_v7  ;;  %v1301_v51 = vround.rtne.f32 %v1008_v16 }
 0x1f1   : > { %v1302_v36 = vround.rtne.f32 %v1009_v4  ;;  %v1039_v60 = vmax.f32 %v1300_v22, -128.0 }
 0x1f2   : > { %v1303_v34 = vround.rtne.f32 %v1010_v5  ;;  %v1040_v25 = vmax.f32 %v1301_v51, -128.0 }
 0x1f3   : > { %v1041_v13 = vmax.f32 %v1302_v36, -128.0  ;;  %v1055_v1 = vmin.f32 %v1039_v60, 127.0 }
 0x1f4   : > { %v1042_v50 = vmax.f32 %v1303_v34, -128.0  ;;  %v1056_v23 = vmin.f32 %v1040_v25, 127.0 }
 0x1f5   : > { %v1057_v59 = vmin.f32 %v1041_v13, 127.0  ;;  %v1071_v61 = vtrunc.f32 %v1055_v1 }
 0x1f6   : > { %v1058_v53 = vmin.f32 %v1042_v50, 127.0  ;;  %v1072_v6 = vtrunc.f32 %v1056_v23 }
 0x1f7   : > { %v1073_v17 = vtrunc.f32 %v1057_v59 }
 0x1f8   : > { %v1074_v55 = vtrunc.f32 %v1058_v53 }
 0x1f9   : > { %v1099_v10 = vpack.c.f32.eXmY %v1071_v61, %v1073_v17, 312 }
 0x1fa   : > { %v1109_v35 = vpack.c.f32.eXmY %v1072_v6, %v1074_v55, 312 }
 0x1fb   : > { %v1103_v21 = vpack.c.b8 %v1099_v10, %v1095_v26 }
 0x1fc   : > { %v1113_v43 = vpack.c.b8 %v1109_v35, %v1105_v14 }
 0x1fd   : > { %1119 = vrot.lane.b32.xlu1 %v1103_v21, %s1599_s24 }
 0x1fe   : > { %1121 = vrot.lane.b32.xlu0 %v1113_v43, %s1599_s24  ;;  %s1483_s24 = sshll.u32 %s1600_s17, 4  ;;  %s1484_s24 = int_to_ptr.vmem [resolvable:$false] %s1483_s24 }
 0x1ff   : > { %s1485_s26 = scalar_lea.vmem %s1484_s24, 512  ;;  %p1486_p9 = scmp.lt.s32.totalorder %s2178_s7, %s1484_s24 }
 0x200   : > { %p1487_p11 = scmp.lt.s32.totalorder %s1485_s26, %s1479_s15 }
 0x202   : > { %p1488_p12 = por %p1487_p11, %p1486_p9 }
 0x204   : > { %p1489_p13 = pnand %p1488_p12, %p1482_p8 }
 0x25b   : > { %v1116_v39 = vpop.permute.xlu1 %1115 }
 0x25c   : > { %v1118_v48 = vpop.permute.xlu0 %1117 }
 0x25d   : > { %v1124_v47 = vsel %vm1123_vm4, %v1116_v39, %v1118_v48 }
 0x25e   : > { %1126 = vst [vmem:[%s1744_s8] sm:$0xff] %v1124_v47 }
 0x26f   : > { %v1120_v37 = vpop.permute.xlu1 %1119 }
 0x270   : > { %v1122_v28 = vpop.permute.xlu0 %1121 }
 0x271   : > { %v1125_v54 = vsel %vm1123_vm4, %v1120_v37, %v1122_v28 }
 0x272   : > { %1127 = vst [vmem:[%s1744_s8 + $0x8] sm:$0xff] %v1125_v54 }
 0x273   : > { %1492 = shalt.err (!%p1489_p13)
}
 0x274   : > { %s1493_s27 = scalar_lea.hbm %s2176_s25, 256  ;;  %s1497_s30 = scalar_lea.hbm %s2244_s3, 4608 }
 0x275   : > { %p1494_p0 = scmp.ne.s32.totalorder %s2176_s25, %s1493_s27  ;;  %p1498_p3 = scmp.lt.u32.totalorder %s2176_s25, %s2244_s3 }
 0x276   : > { %p1499_p4 = scmp.lt.u32.totalorder %s1497_s30, %s1493_s27  ;;  %p1501_p7 = scmp.lt.u32.totalorder %s1493_s27, %s2176_s25 }
 0x277   : > { %p1495_p1 = pnand %p1494_p0, %p1692_p6 }
 0x278   : > { %p1500_p5 = por %p1499_p4, %p1498_p3 }
 0x279   : > { %p1496_p2 = pneg %p1495_p1 }
 0x27a   : > { %p1502_p8 = por %p1501_p7, %p1500_p5 }
 0x27c   : > { %p1503_p9 = pnand %p1502_p8, %p1496_p2 }
 0x27e   : > { %1506 = shalt.err (!%p1503_p9)
}
 0x27f   : > { %s1601_s10 = smov 128   ;;  %s1602_s11 = smov 384  }
 0x280   : > { %s1603_s15 = smov 8  }
 0x281   : > { %1306 = dma.vmem_to_hbm [thread:$0]  (%p1692_p6), %s2178_s7, 256, %s2176_s25, %s2183_s16, %s1601_s10, %s1602_s11, %s1603_s15  }
 0x282 PF: > { %p1312_p11 = scmp.ge.s32.totalorder %s1589_s21, 2  ;;  %s1161_s17 = sand.u32 1, %s1553_s12  }
 0x283   : > { %s1162_s24 = scalar_lea.sflag [#allocation5], %s1161_s17 }
 0x284   : > { %p1309_p12 = pnand %p1312_p11, %p1704_p10 }
 0x286   : > { %1548 = dma.done.wait (!%p1309_p12), %s1162_s24, 256  }
 0x287   : > { %1550 = vsyncadd (!%p1309_p12), %s1162_s24, 4294967040  ;;  %s16_s21 = sadd.s32 1, %s1589_s21   ;;  %s2250_s28 = sld [smem:[#allocation7_spill]] }
 0x288   : > { %p13_p13 = scmp.ge.s32.totalorder %s16_s21, 20   ;;  %s2251_s12 = smov %s1557_s13 }
 0x289   : > { %s2252_s13 = smov %s1561_s14  ;;  %s2253_s14 = smov %s1712_s9 }
 0x28a   : > { %s2254_s15 = smov %s1577_s18  ;;  %s2255_s16 = smov %s1581_s19 }
 0x28b   : > { %s2256_s17 = smov %s1585_s20  ;;  %s2257_s18 = smov %s2261_s22 }
 0x28c   : > { %s2258_s19 = smov %s2265_s23  ;;  %15 = sbr.rel (!%p13_p13) target bundleno = 6 (0x6), region = 124 }
 0x28d   : > { %s2259_s20 = smov %s2250_s28 }
 0x293   :  { %1167 = vsyncpa [#allocation5], 1 }
 0x294   :  { %1169 = vsyncpa [#allocation5 + $0x1], 1 }

</bundles_post_ra>
